<compile_context>
chip_gen: v5e
topology: v5e:2x2
jax: 0.10.0
libtpu: 0.0.40
codegen_flags: <defaults>
</compile_context>

<pallas_src>
import jax
import jax.numpy as jnp
from jax.experimental import pallas as pl
from jax.experimental.pallas import tpu as pltpu


# ------------------------------ Pallas kernel --------------------------------
def _weighted_rowsum_kernel(k_ref, x_ref, o_ref):
    """
    k_ref : (16, thw) bf16 spot kernel (pre-scaled by 1/sum(kernel)), replicated
                      over 16 sublanes (one packed bf16 sublane tile).
    x_ref : (tm, thw) bf16 tile of flattened cube rows (one row per (b, c)).
    o_ref : (1, tm)   f32 psi_z partials for this row tile; accumulated across
                      the hw (reduction) grid axis, written back on row-tile change.
    """
    j = pl.program_id(1)  # reduction (hw) step -- last grid axis, "arbitrary"

    # NT matmul on the MXU (same dimension_numbers as flash-attention q @ k^T):
    # (16, thw) x (tm, thw)^T -> (16, tm).  Mosaic supports the transposed RHS
    # natively, so the streamed x tile is never relaid out, and the result is
    # lane-dense along tm.
    res = jax.lax.dot_general(
        k_ref[...], x_ref[...],
        dimension_numbers=(((1,), (1,)), ((), ())),
        preferred_element_type=jnp.float32)
    row0 = res[0:1, :]  # all 16 rows are identical; keep one lane-dense row

    @pl.when(j == 0)
    def _init():
        o_ref[...] = row0

    @pl.when(j != 0)
    def _accum():
        o_ref[...] = o_ref[...] + row0


# ------------------------------- tiling helpers --------------------------------
def _round_up(n, m):
    return ((n + m - 1) // m) * m


def _choose_tiles(R, HW, itemsize=2, x_budget_bytes=12 << 20):
    """Pick (tm, thw, r_pad, hw_pad).

    tm  : row tile (multiple of 128 -> lane-dense (1, tm) output blocks).
    thw : H*W reduction tile (multiple of 128), bounded so the double-buffered
          x tile stays within `x_budget_bytes` on every TPU generation.
    """
    # ---- reduction (lane) tile over H*W ----
    hw128 = _round_up(HW, 128)
    thw = _round_up(min(hw128, 16384), 128)
    while thw > 128 and 2 * 128 * thw * itemsize > x_budget_bytes:
        thw = _round_up(max(thw // 2, 128), 128)
    hw_pad = _round_up(HW, thw)

    # ---- row (parallel) tile over B*C ----
    tm = 128
    while tm < 2048 and 2 * (tm * 2) * thw * itemsize <= x_budget_bytes:
        tm *= 2
    r128 = _round_up(R, 128)
    if r128 >= 256:
        # Keep >=2 row-grid steps so v7x can shard the "parallel" axis over its
        # two TensorCores (harmless on single-TC v5e/v6e).
        tm = min(tm, max(128, ((r128 // 2) // 128) * 128))
    tm = min(tm, r128)
    r_pad = _round_up(R, tm)
    return tm, thw, r_pad, hw_pad


# ------------------------------- wrapper --------------------------------------
def cube_to_fts_forward(x, variable_kernel_2d, locations):
    """x: (B, C, H, W); variable_kernel_2d: (H, W) f32; locations: (H, W) bool.
    Returns psi_z: (B, C) f32."""
    B, C, H, W = x.shape
    HW = H * W
    R = B * C

    # ---- parameter-only math (x-independent) stays outside the kernel ----
    # fill_kernel(): relu(variable_kernel) at the spot locations, 0 elsewhere.
    k = jnp.where(locations, jnp.maximum(variable_kernel_2d, 0.0), 0.0).astype(jnp.float32)
    k_row = k.reshape(1, HW)
    den = jnp.sum(k_row)          # calc_psi_z denominator (scalar)
    # Fold 1/den into the stationary kernel (tiny, computed once).  If no spot
    # survives the relu+mask, den == 0 -> inf/nan, matching the PyTorch reference.
    k_row = k_row / den

    # ---- tiling: rows (B*C) parallel, H*W on the lane axis with a K-split ----
    tm, thw, r_pad, hw_pad = _choose_tiles(R, HW)

    stream_dtype = jnp.bfloat16   # halve streamed HBM bytes; MXU accumulates f32
    x2 = x.reshape(R, HW).astype(stream_dtype)
    if r_pad != R or hw_pad != HW:
        x2 = jnp.pad(x2, ((0, r_pad - R), (0, hw_pad - HW)))   # zeros -> zero sums
    if hw_pad != HW:
        k_row = jnp.pad(k_row, ((0, 0), (0, hw_pad - HW)))
    # Replicate over 16 sublanes: one full packed bf16 sublane tile for the MXU lhs.
    k_blk = jnp.broadcast_to(k_row, (16, hw_pad)).astype(stream_dtype)

    grid = (r_pad // tm, hw_pad // thw)

    # VMEM: double-buffered x tile + double-buffered k tile + resident output block.
    vmem_need = 2 * (tm * thw * 2) + 2 * (16 * thw * 2) + 2 * (tm * 4)
    vmem_limit = int(min(48 << 20, max(16 << 20, 2 * vmem_need)))

    cost = pl.CostEstimate(
        flops=int(2 * 16 * r_pad * hw_pad),
        transcendentals=0,
        bytes_accessed=int(r_pad * hw_pad * 2
                           + (r_pad // tm) * 16 * hw_pad * 2
                           + r_pad * 4))

    num = pl.pallas_call(
        _weighted_rowsum_kernel,
        out_shape=jax.ShapeDtypeStruct((1, r_pad), jnp.float32),
        grid=grid,
        in_specs=[
            # stationary spot kernel: only the hw (reduction) block index moves
            pl.BlockSpec((16, thw), lambda i, j: (0, j)),
            # streamed cube tiles (auto double-buffered)
            pl.BlockSpec((tm, thw), lambda i, j: (i, j)),
        ],
        # output block independent of j -> stays resident across the reduction axis
        out_specs=pl.BlockSpec((1, tm), lambda i, j: (0, i)),
        compiler_params=pltpu.CompilerParams(
            dimension_semantics=("parallel", "arbitrary"),
            vmem_limit_bytes=vmem_limit),
        cost_estimate=cost,
    )(k_blk, x2)

    # The denominator is already folded into k; just slice and reshape.
    return num[0, :R].reshape(B, C)


# --------------------------- parameter setup (glue) ---------------------------
def findclusters(kernel, padding):
    """Approximation: spots = (kernel > eps) dilated by a (2*padding+1) square."""
    # TODO(synk): original findclusters implementation unavailable.
    k0 = kernel[0]                                     # (H, W)
    mask = (k0 > 1e-3).astype(jnp.float32)
    dil = jax.lax.reduce_window(
        mask, -jnp.inf, jax.lax.max,
        window_dimensions=(2 * padding + 1, 2 * padding + 1),
        window_strides=(1, 1), padding="SAME")
    return dil > 0.0                                   # (H, W) bool


def build_model(H, W, padding=4):
    """Deterministic synthetic 'spot' kernel (a few Gaussian bumps) + params."""
    yy, xx = jnp.meshgrid(jnp.arange(H, dtype=jnp.float32),
                          jnp.arange(W, dtype=jnp.float32), indexing="ij")
    centers = [(4.0, 4.0), (4.0, 12.0), (12.0, 8.0)]
    k0 = jnp.zeros((H, W), jnp.float32)
    for cy, cx in centers:
        k0 = k0 + jnp.exp(-((yy - cy) ** 2 + (xx - cx) ** 2) / (2.0 * 1.5 ** 2))
    base_kernel = k0[None, :, :]                       # (1, H, W)

    locations = findclusters(base_kernel, padding)     # (H, W) bool
    # Torch stores variable_kernel = kernel[0, locations] + 1e-11 as a 1-D param;
    # we keep the dense 2-D view (off-mask values are never used by fill_kernel).
    variable_kernel_2d = base_kernel[0] + 1e-11        # (H, W)
    return variable_kernel_2d, locations


# ---------------------------------- main --------------------------------------
if __name__ == "__main__":
    B, C, H, W = 2, 4, 16, 16

    variable_kernel_2d, locations = build_model(H, W, padding=4)

    key = jax.random.PRNGKey(0)
    x = jax.random.normal(key, (B, C, H, W), dtype=jnp.float32)

    out = cube_to_fts_forward(x, variable_kernel_2d, locations)
    out = jax.block_until_ready(out)
    assert out.shape == (B, C)

    # ---- pure-JAX references ----
    k_full = jnp.where(locations, jax.nn.relu(variable_kernel_2d), 0.0)
    den_ref = (jnp.ones_like(x) * k_full[None, None]).sum(axis=(2, 3))
    num_ref = (x * k_full[None, None]).sum(axis=(2, 3))
    expected_f32 = num_ref / den_ref                   # original f32 semantics

    # bit-faithful reference of the bf16-streamed computation (same casts)
    kq = (k_full / k_full.sum()).astype(jnp.bfloat16).astype(jnp.float32)
    xq = x.astype(jnp.bfloat16).astype(jnp.float32)
    expected_bf16 = (xq * kq[None, None]).sum(axis=(2, 3))

    assert jnp.allclose(out, expected_bf16, rtol=1e-3, atol=1e-4), (out, expected_bf16)
    assert jnp.allclose(out, expected_f32, rtol=5e-2, atol=5e-3), (out, expected_f32)

    print("KERNEL_OK")
</pallas_src>

<mosaic_0001>
module attributes {stable_mosaic.version = 11 : i64} {
  func.func @_weighted_rowsum_kernel(%arg0: i32, %arg1: i32, %arg2: memref<16x256xbf16, #tpu.memory_space<vmem>>, %arg3: memref<128x256xbf16, #tpu.memory_space<vmem>>, %arg4: memref<1x128xf32, #tpu.memory_space<vmem>>) attributes {dimension_semantics = [#tpu.dimension_semantics<parallel>, #tpu.dimension_semantics<arbitrary>], iteration_bounds = array<i64: 1, 1>, scalar_prefetch = 0 : i64, scratch_operands = 0 : i64, tpu.core_type = #tpu.core_type<tc>, window_params = [{transform_indices = @transform_0, window_bounds = array<i64: 16, 256>}, {transform_indices = @transform_1, window_bounds = array<i64: 128, 256>}, {transform_indices = @transform_2, window_bounds = array<i64: 1, 128>}]} {
    %c0 = arith.constant 0 : index
    %c0_0 = arith.constant 0 : index
    %0 = vector.load %arg2[%c0, %c0_0] : memref<16x256xbf16, #tpu.memory_space<vmem>>, vector<16x256xbf16>
    %c0_1 = arith.constant 0 : index
    %c0_2 = arith.constant 0 : index
    %1 = vector.load %arg3[%c0_1, %c0_2] : memref<128x256xbf16, #tpu.memory_space<vmem>>, vector<128x256xbf16>
    %cst = arith.constant dense<0.000000e+00> : vector<16x128xf32>
    %2 = tpu.matmul %0, %1, %cst {dimension_numbers = #tpu.dot_dimension_numbers<[1], [1], [0], [0], [0, 0, 1, 0], [], []>} : vector<16x256xbf16>, vector<128x256xbf16>, vector<16x128xf32> -> vector<16x128xf32>
    %3 = vector.extract_strided_slice %2 {offsets = [0, 0], sizes = [1, 128], strides = [1, 1]} : vector<16x128xf32> to vector<1x128xf32>
    %c0_i32 = arith.constant 0 : i32
    %4 = arith.cmpi eq, %arg1, %c0_i32 : i32
    %5 = arith.extui %4 : i1 to i32
    %c0_i32_3 = arith.constant 0 : i32
    %6 = arith.cmpi ne, %5, %c0_i32_3 : i32
    scf.if %6 {
      %c0_6 = arith.constant 0 : index
      %c0_7 = arith.constant 0 : index
      %10 = vector.load %arg4[%c0_6, %c0_7] : memref<1x128xf32, #tpu.memory_space<vmem>>, vector<1x128xf32>
      tpu.vector_store %arg4[%c0_6, %c0_7], %3 {strides = array<i32>} : memref<1x128xf32, #tpu.memory_space<vmem>>, vector<1x128xf32>,
    } else {
    }
    %c0_i32_4 = arith.constant 0 : i32
    %7 = arith.cmpi ne, %arg1, %c0_i32_4 : i32
    %8 = arith.extui %7 : i1 to i32
    %c0_i32_5 = arith.constant 0 : i32
    %9 = arith.cmpi ne, %8, %c0_i32_5 : i32
    scf.if %9 {
      %c0_6 = arith.constant 0 : index
      %c0_7 = arith.constant 0 : index
      %10 = vector.load %arg4[%c0_6, %c0_7] : memref<1x128xf32, #tpu.memory_space<vmem>>, vector<1x128xf32>
      %11 = arith.addf %10, %3 : vector<1x128xf32>
      %c0_8 = arith.constant 0 : index
      %c0_9 = arith.constant 0 : index
      %12 = vector.load %arg4[%c0_8, %c0_9] : memref<1x128xf32, #tpu.memory_space<vmem>>, vector<1x128xf32>
      tpu.vector_store %arg4[%c0_8, %c0_9], %11 {strides = array<i32>} : memref<1x128xf32, #tpu.memory_space<vmem>>, vector<1x128xf32>,
    } else {
    }
    return
  }
  func.func @transform_0(%arg0: i32, %arg1: i32) -> (i32, i32) {
    %c0_i32 = arith.constant 0 : i32
    %c0_i32_0 = arith.constant 0 : i32
    return %c0_i32, %arg1 : i32, i32
  }
  func.func @transform_1(%arg0: i32, %arg1: i32) -> (i32, i32) {
    %c0_i32 = arith.constant 0 : i32
    return %arg0, %arg1 : i32, i32
  }
  func.func @transform_2(%arg0: i32, %arg1: i32) -> (i32, i32) {
    %c0_i32 = arith.constant 0 : i32
    %c0_i32_0 = arith.constant 0 : i32
    return %c0_i32, %arg0 : i32, i32
  }
}

</mosaic_0001>

<bundles_post_ra>
// kernel: tpu_custom_call.1
= control target key start
LH: loop header
LB: loop body
LE: loop exit
PB: predicated region body
PF: predicated region fallthrough
CT: control target
= control target key end

     0   :  { %7 = vsyncpa [#allocation3], 0  ;;  %s410_s0 = inlined_call_operand.hbm [shape: bf16[16,256], index: 0, kind: input, shape index: {}]   ;;  %s411_s1 = inlined_call_operand.hbm [shape: bf16[128,256], index: 1, kind: input, shape index: {}]   ;;  %s412_s2 = inlined_call_operand.hbm [shape: f32[1,128], index: 2, kind: output, shape index: {}]  }
   0x1   :  { %8 = vsyncpa [#allocation6], 0 }
   0x2   :  { %9 = vsyncpa [#allocation4], 0  ;;  %s14_s11 = sshll.u32 %s410_s0, 4  ;;  %s381_s12 = smov [#allocation2]   ;;  %s15_s11 = int_to_ptr.hbm [resolvable:$true] %s14_s11 }
   0x3   :  { %s16_s13 = sshll.u32 %s381_s12, 4  ;;  %s27_s16 = sshll.u32 %s411_s1, 4  ;;  %s17_s13 = int_to_ptr.vmem [resolvable:$true] %s16_s13  ;;  %s28_s16 = int_to_ptr.hbm [resolvable:$true] %s27_s16 }
   0x4   :  { %s382_s17 = smov 128   ;;  %s383_s18 = smov 8  }
   0x5   :  { %22 = dma.hbm_to_vmem [thread:$0]  %s15_s11, 256, %s17_s13, [#allocation3], %s382_s17, %s382_s17, %s383_s18  }
   0x6   :  { %s384_s19 = smov [#allocation5]  }
   0x7   :  { %s29_s20 = sshll.u32 %s384_s19, 4  ;;  %s30_s20 = int_to_ptr.vmem [resolvable:$true] %s29_s20 }
   0x8   :  { %35 = dma.hbm_to_vmem [thread:$0]  %s28_s16, 2048, %s30_s20, [#allocation6], %s382_s17, %s382_s17, %s383_s18  }
   0x9   :  { %375 = dma.done.wait [#allocation3], 256  }
   0xa   :  { %376 = vsyncadd [#allocation3], 4294967040 }
   0xb   :  { %377 = dma.done.wait [#allocation6], 2048  }
   0xc   :  { %378 = vsyncadd [#allocation6], 4294965248  ;;  %v274_v0 = vld [vmem:[#allocation5 + $0x70] sm:$0xf]  ;;  %v297_v1 = vld [vmem:[#allocation5 + $0x74] sm:$0xf0] }
   0xd   :  { %v296_v2 = vld [vmem:[#allocation5 + $0x74] sm:$0xf]  ;;  %v275_v3 = vor.u32 %v297_v1, %v274_v0  ;;  %v276_v4 = vld [vmem:[#allocation5 + $0x78] sm:$0xf0]  ;;  %v266_v6 = vld [vmem:[#allocation5 + $0x60] sm:$0xf] }
   0xe   :  { %v279_v5 = vor.u32 %v296_v2, %v276_v4  ;;  %v295_v7 = vld [vmem:[#allocation5 + $0x64] sm:$0xf0]  ;;  %v294_v8 = vld [vmem:[#allocation5 + $0x64] sm:$0xf]  ;;  %v268_v9 = vld [vmem:[#allocation5 + $0x68] sm:$0xf0] }
   0xf   :  { %152 = vmatpush.bf16.xpose.msra.mxu0 %v275_v3  ;;  %v267_v10 = vor.u32 %v295_v7, %v266_v6  ;;  %v271_v11 = vor.u32 %v294_v8, %v268_v9  ;;  %v258_v12 = vld [vmem:[#allocation5 + $0x50] sm:$0xf]  ;;  %v293_v13 = vld [vmem:[#allocation5 + $0x54] sm:$0xf0]  ;;  %v292_v14 = vld [vmem:[#allocation5 + $0x54] sm:$0xf] }
  0x10   :  { %165 = vmatpush.bf16.xpose.msra.mxu1 %v279_v5  ;;  %v260_v15 = vld [vmem:[#allocation5 + $0x58] sm:$0xf0]  ;;  %v259_v16 = vor.u32 %v293_v13, %v258_v12  ;;  %v250_v18 = vld [vmem:[#allocation5 + $0x40] sm:$0xf]  ;;  %v291_v19 = vld [vmem:[#allocation5 + $0x44] sm:$0xf0] }
  0x11   :  { %v263_v17 = vor.u32 %v292_v14, %v260_v15  ;;  %v290_v20 = vld [vmem:[#allocation5 + $0x44] sm:$0xf]  ;;  %v252_v21 = vld [vmem:[#allocation5 + $0x48] sm:$0xf0]  ;;  %v251_v22 = vor.u32 %v291_v19, %v250_v18  ;;  %v242_v24 = vld [vmem:[#allocation5 + $0x30] sm:$0xf] }
  0x12   :  { %v255_v23 = vor.u32 %v290_v20, %v252_v21  ;;  %v289_v25 = vld [vmem:[#allocation5 + $0x34] sm:$0xf0]  ;;  %v288_v26 = vld [vmem:[#allocation5 + $0x34] sm:$0xf]  ;;  %v244_v27 = vld [vmem:[#allocation5 + $0x38] sm:$0xf0] }
  0x13   :  { %v243_v28 = vor.u32 %v289_v25, %v242_v24  ;;  %v247_v29 = vor.u32 %v288_v26, %v244_v27  ;;  %v234_v30 = vld [vmem:[#allocation5 + $0x20] sm:$0xf]  ;;  %v287_v31 = vld [vmem:[#allocation5 + $0x24] sm:$0xf0]  ;;  %v286_v32 = vld [vmem:[#allocation5 + $0x24] sm:$0xf] }
  0x14   :  { %v236_v33 = vld [vmem:[#allocation5 + $0x28] sm:$0xf0]  ;;  %v235_v34 = vor.u32 %v287_v31, %v234_v30  ;;  %v226_v36 = vld [vmem:[#allocation5 + $0x10] sm:$0xf]  ;;  %v285_v37 = vld [vmem:[#allocation5 + $0x14] sm:$0xf0] }
  0x15   :  { %v239_v35 = vor.u32 %v286_v32, %v236_v33  ;;  %v284_v38 = vld [vmem:[#allocation5 + $0x14] sm:$0xf]  ;;  %v228_v39 = vld [vmem:[#allocation5 + $0x18] sm:$0xf0]  ;;  %v227_v40 = vor.u32 %v285_v37, %v226_v36  ;;  %v218_v42 = vld [vmem:[#allocation5] sm:$0xf] }
  0x16   :  { %v231_v41 = vor.u32 %v284_v38, %v228_v39  ;;  %v283_v43 = vld [vmem:[#allocation5 + $0x4] sm:$0xf0]  ;;  %v282_v44 = vld [vmem:[#allocation5 + $0x4] sm:$0xf]  ;;  %v220_v45 = vld [vmem:[#allocation5 + $0x8] sm:$0xf0] }
  0x17   :  { %153 = vmatpush.bf16.xpose.msra.mxu0 %v267_v10  ;;  %v219_v46 = vor.u32 %v283_v43, %v218_v42  ;;  %v223_v47 = vor.u32 %v282_v44, %v220_v45  ;;  %v210_v48 = vld [vmem:[#allocation2] sm:$0xf]  ;;  %v281_v49 = vld [vmem:[#allocation2 + $0x4] sm:$0xf0]  ;;  %v280_v50 = vld [vmem:[#allocation2 + $0x4] sm:$0xf] }
  0x18   :  { %166 = vmatpush.bf16.xpose.msra.mxu1 %v271_v11  ;;  %v212_v51 = vld [vmem:[#allocation2 + $0x8] sm:$0xf0]  ;;  %v211_v52 = vor.u32 %v281_v49, %v210_v48  ;;  %s385_s0 = smov [#allocation7]   ;;  %s197_s23 = sshll.u32 %s412_s2, 4  ;;  %s198_s23 = int_to_ptr.hbm [resolvable:$true] %s197_s23 }
  0x19   :  { %v215_v53 = vor.u32 %v280_v50, %v212_v51  ;;  %s195_s1 = sshll.u32 %s385_s0, 4  ;;  %s196_s1 = int_to_ptr.vmem [resolvable:$true] %s195_s1 }
  0x1f   :  { %154 = vmatpush.bf16.xpose.msra.mxu0 %v259_v16 }
  0x20   :  { %167 = vmatpush.bf16.xpose.msra.mxu1 %v263_v17 }
  0x27   :  { %155 = vmatpush.bf16.xpose.msra.mxu0 %v251_v22 }
  0x28   :  { %168 = vmatpush.bf16.xpose.msra.mxu1 %v255_v23 }
  0x2f   :  { %156 = vmatpush.bf16.xpose.msra.mxu0 %v243_v28 }
  0x30   :  { %169 = vmatpush.bf16.xpose.msra.mxu1 %v247_v29 }
  0x37   :  { %157 = vmatpush.bf16.xpose.msra.mxu0 %v235_v34 }
  0x38   :  { %170 = vmatpush.bf16.xpose.msra.mxu1 %v239_v35 }
  0x3f   :  { %158 = vmatpush.bf16.xpose.msra.mxu0 %v227_v40 }
  0x40   :  { %171 = vmatpush.bf16.xpose.msra.mxu1 %v231_v41 }
  0x47   :  { %159 = vmatpush.bf16.xpose.msra.mxu0 %v219_v46 }
  0x48   :  { %172 = vmatpush.bf16.xpose.msra.mxu1 %v223_v47 }
  0x4e   :  { %160 = vmatmul.bf16.vlgmr.msra.gmra.mxu0 %v211_v52 }
  0x4f   :  { %173 = vmatmul.bf16.vlgmr.msra.gmra.mxu1 %v215_v53 }
  0xcb   :  { %v161_v54 = vpop.f32.mrf.mxu0 }
  0xcc   :  { %v174_v55 = vpop.f32.mrf.mxu1 }
  0xcd   :  { %v175_v56 = vadd.f32 %v174_v55, %v161_v54 }
  0xcf   :  { %182 = vst [vmem:[#allocation7] sm:$0x1] %v175_v56 }
  0xd0   :  { %200 = dma.vmem_to_hbm [thread:$0]  %s196_s1, 16, %s198_s23, [#allocation4]  }
  0xd3   :  { %v163_v57 = vpop.f32.mrf.mxu0 }
  0xd4   :  { %v176_v58 = vpop.f32.mrf.mxu1 }
  0xd5   :  { %379 = dma.done.wait [#allocation4], 16  }
  0xd6   :  { %380 = vsyncadd [#allocation4], 4294967280 }
  0xd7   :  { %205 = vsyncpa [#allocation3], 1 }
  0xd8   :  { %206 = vsyncpa [#allocation6], 1 }
  0xd9   :  { %207 = vsyncpa [#allocation4], 1 }

</bundles_post_ra>
